<compile_context>
chip_gen: v6e
topology: v6e:2x2x1
jax: 0.10.0
libtpu: 0.0.40
codegen_flags: <defaults>
</compile_context>

<pallas_src>
import functools

import jax
import jax.numpy as jnp
from jax import lax
from jax.experimental import pallas as pl
from jax.experimental.pallas import tpu as pltpu

_DEFAULT_CHUNK = 256            # ids gathered per grid step (multiple of 32)
_DMA_INFLIGHT = 16              # outstanding row DMAs in the HBM-gather path
_ONE_HOT_MAX_V = 2048           # one-hot/MXU resident path only while V stays cheap
_ONE_HOT_MAX_TABLE_BYTES = 8 * 1024 * 1024   # 2x-buffered table must fit v7x 64 MiB VMEM
_MAX_IDS_PER_CALL = 16384       # caps SMEM id footprint of the DMA-gather path (64 KiB)


# --------------------------------------------------------------------------- #
# Path A: VMEM-resident table, one-hot gather on the MXU.
# --------------------------------------------------------------------------- #
def _embed_onehot_kernel(ids_ref, table_ref, o_ref):
    # ids_ref:   (chunk, 1) int32 in VMEM
    # table_ref: (V, E) full embedding table, resident in VMEM (constant index_map)
    # o_ref:     (chunk, E) output block
    ids = ids_ref[...]
    v = table_ref.shape[0]
    hot = (ids == lax.broadcasted_iota(jnp.int32, (ids.shape[0], v), 1))
    gathered = jnp.dot(hot.astype(table_ref.dtype), table_ref[...],
                       preferred_element_type=jnp.float32,
                       precision=lax.Precision.HIGHEST)
    o_ref[...] = gathered.astype(o_ref.dtype)


def _embed_resident_table(ids, table, chunk):
    n = ids.shape[0]
    v, e = table.shape
    esize = jnp.dtype(table.dtype).itemsize
    vmem_bytes = 2 * v * e * esize + 4 * chunk * e * esize + chunk * v * 4 + (4 << 20)
    return pl.pallas_call(
        _embed_onehot_kernel,
        out_shape=jax.ShapeDtypeStruct((n, e), table.dtype),
        grid=(pl.cdiv(n, chunk),),
        in_specs=[
            pl.BlockSpec((chunk, 1), lambda i: (i, 0)),   # this step's id block
            pl.BlockSpec((v, e), lambda i: (0, 0)),       # whole table, stays resident
        ],
        out_specs=pl.BlockSpec((chunk, e), lambda i: (i, 0)),
        compiler_params=pltpu.CompilerParams(
            dimension_semantics=("parallel",),
            vmem_limit_bytes=int(min(max(vmem_bytes, 32 << 20), 96 << 20)),
        ),
        cost_estimate=pl.CostEstimate(
            flops=2 * n * v * e, transcendentals=0,
            bytes_accessed=v * e * esize + n * 4 + n * e * esize),
    )(ids.reshape(n, 1), table)


# --------------------------------------------------------------------------- #
# Path B: table stays in HBM, manual per-row DMA gather with copies in flight.
# --------------------------------------------------------------------------- #
def _embed_dma_gather_kernel(ids_ref, table_hbm, o_ref, sem, *, chunk, n_ids):
    # ids_ref:   (n_ids,) int32 in SMEM (scalar-prefetched)
    # table_hbm: (V, E) embedding table left in HBM (memory_space=pl.ANY)
    # o_ref:     (chunk, E) output block in VMEM; rows are DMA'd straight into it
    # sem:       (_DMA_INFLIGHT,) DMA semaphores
    base = pl.program_id(0) * chunk
    drain = min(chunk, _DMA_INFLIGHT)

    def _wait(slot):
        # Only the shapes matter for the wait amount; indices are placeholders.
        pltpu.make_async_copy(table_hbm.at[0], o_ref.at[0], sem.at[slot]).wait()

    @pl.loop(0, chunk)
    def _(j):
        slot = j % _DMA_INFLIGHT

        @pl.when(j >= _DMA_INFLIGHT)
        def _():
            _wait(slot)                              # reclaim this slot's previous copy

        idx = jnp.minimum(base + j, n_ids - 1)       # clamp for the ragged tail block
        pltpu.make_async_copy(table_hbm.at[ids_ref[idx]], o_ref.at[j],
                              sem.at[slot]).start()

    @pl.loop(0, drain)
    def _(s):
        _wait(s)


def _embed_dma_gather(ids, table, chunk):
    n = ids.shape[0]
    v, e = table.shape
    esize = jnp.dtype(table.dtype).itemsize
    kernel = functools.partial(_embed_dma_gather_kernel, chunk=chunk, n_ids=n)
    vmem_bytes = 4 * chunk * e * esize + (4 << 20)
    return pl.pallas_call(
        kernel,
        out_shape=jax.ShapeDtypeStruct((n, e), table.dtype),
        grid_spec=pltpu.PrefetchScalarGridSpec(
            num_scalar_prefetch=1,
            grid=(pl.cdiv(n, chunk),),
            in_specs=[pl.BlockSpec(memory_space=pl.ANY)],   # table stays in HBM
            out_specs=pl.BlockSpec((chunk, e), lambda i, ids_ref: (i, 0)),
            scratch_shapes=[pltpu.SemaphoreType.DMA((_DMA_INFLIGHT,))],
        ),
        compiler_params=pltpu.CompilerParams(
            dimension_semantics=("arbitrary",),
            vmem_limit_bytes=int(min(max(vmem_bytes, 32 << 20), 96 << 20)),
        ),
        cost_estimate=pl.CostEstimate(
            flops=0, transcendentals=0,
            bytes_accessed=2 * n * e * esize + n * 4),
    )(ids, table)


# --------------------------------------------------------------------------- #
# Wrapper: WordEmbed.forward (inference mode)
# --------------------------------------------------------------------------- #
@functools.partial(jax.jit, static_argnames=("chunk", "force_dma_gather"))
def word_embed(x, embed_table, *, chunk=_DEFAULT_CHUNK, force_dma_gather=False):
    """x: (B, D, M, W) int token ids; embed_table: (V, E). Returns (B, D, M, W, E)."""
    v, e = embed_table.shape
    esize = jnp.dtype(embed_table.dtype).itemsize
    orig_shape = x.shape
    n = 1
    for d in orig_shape:
        n *= int(d)

    # dtype-aware sublane multiple (8/16/32 for f32/bf16/int8) -> 32 covers all
    chunk = max(32, (int(chunk) + 31) // 32 * 32)
    ids = x.reshape(n).astype(jnp.int32)

    use_resident = (not force_dma_gather
                    and v <= _ONE_HOT_MAX_V
                    and v * e * esize <= _ONE_HOT_MAX_TABLE_BYTES)

    if use_resident:
        out2d = _embed_resident_table(ids, embed_table, chunk)
    else:
        # Large vocab: HBM row gather.  Segment the id stream so the
        # scalar-prefetched id array never overflows SMEM.
        pieces = [
            _embed_dma_gather(ids[s:s + _MAX_IDS_PER_CALL], embed_table, chunk)
            for s in range(0, n, _MAX_IDS_PER_CALL)
        ]
        out2d = pieces[0] if len(pieces) == 1 else jnp.concatenate(pieces, axis=0)

    # BatchNorm3d(affine=False) and Dropout are identities in inference mode.
    # TODO(synk): training-mode dropout (pltpu.prng_random_bits mask) and the
    #             use_in_bn BatchNorm3d branch are not emitted.
    return out2d.reshape(*orig_shape, e)


if __name__ == "__main__":
    # global_config-equivalent (synthetic, small)
    vocab_size = 50
    word_embed_size = 50       # global_config['word_embed_size']
    batch_size, max_n_days, max_n_msgs, max_n_words = 2, 4, 4, 8   # 256 token ids

    key = jax.random.PRNGKey(0)
    k_ids, k_tbl = jax.random.split(key)
    x = jax.random.randint(
        k_ids, (batch_size, max_n_days, max_n_msgs, max_n_words),
        0, vocab_size, dtype=jnp.int32)
    embed_table = jax.random.normal(
        k_tbl, (vocab_size, word_embed_size), dtype=jnp.float32)

    ref = jnp.take(embed_table, x, axis=0)   # eval-mode WordEmbed == plain lookup

    # Fast path: VMEM-resident table + one-hot MXU gather (4 grid steps at chunk=64).
    out = jax.block_until_ready(word_embed(x, embed_table, chunk=64))
    assert out.shape == (batch_size, max_n_days, max_n_msgs,
                         max_n_words, word_embed_size)
    assert jnp.allclose(out, ref, atol=1e-2), "resident-table path mismatch"

    # Fallback path: HBM table + per-row DMA gather (forced so it is also exercised).
    out_dma = jax.block_until_ready(
        word_embed(x, embed_table, chunk=64, force_dma_gather=True))
    assert jnp.allclose(out_dma, ref, atol=1e-6), "dma-gather path mismatch"

    print("KERNEL_OK")
</pallas_src>

<mosaic_0001>
module attributes {stable_mosaic.version = 11 : i64} {
  func.func @_embed_onehot_kernel(%arg0: i32, %arg1: memref<64x1xi32, #tpu.memory_space<vmem>>, %arg2: memref<50x50xf32, #tpu.memory_space<vmem>>, %arg3: memref<64x50xf32, #tpu.memory_space<vmem>>) attributes {dimension_semantics = [#tpu.dimension_semantics<parallel>], iteration_bounds = array<i64: 4>, scalar_prefetch = 0 : i64, scratch_operands = 0 : i64, tpu.core_type = #tpu.core_type<tc>, window_params = [{transform_indices = @transform_0, window_bounds = array<i64: 64, 1>}, {pipeline_mode = #tpu.pipeline_mode<synchronous>, transform_indices = @transform_1, window_bounds = array<i64: 50, 50>}, {transform_indices = @transform_2, window_bounds = array<i64: 64, 50>}]} {
    %c0 = arith.constant 0 : index
    %c0_0 = arith.constant 0 : index
    %0 = vector.load %arg1[%c0, %c0_0] : memref<64x1xi32, #tpu.memory_space<vmem>>, vector<64x1xi32>
    %1 = tpu.iota {dimensions = array<i32: 1>} : vector<64x50xi32>
    %2 = vector.broadcast %0 : vector<64x1xi32> to vector<64x50xi32>
    %3 = arith.cmpi eq, %2, %1 : vector<64x50xi32>
    %4 = arith.extui %3 : vector<64x50xi1> to vector<64x50xi32>
    %5 = arith.sitofp %4 : vector<64x50xi32> to vector<64x50xf32>
    %c0_1 = arith.constant 0 : index
    %c0_2 = arith.constant 0 : index
    %6 = vector.load %arg2[%c0_1, %c0_2] : memref<50x50xf32, #tpu.memory_space<vmem>>, vector<50x50xf32>
    %cst = arith.constant dense<0.000000e+00> : vector<64x50xf32>
    %7 = tpu.matmul %5, %6, %cst {dimension_numbers = #tpu.dot_dimension_numbers<[1], [0], [0], [1], [0, 0, 1, 1], [], []>, precision = #tpu.contract_precision<fp32>} : vector<64x50xf32>, vector<50x50xf32>, vector<64x50xf32> -> vector<64x50xf32>
    %c0_3 = arith.constant 0 : index
    %c0_4 = arith.constant 0 : index
    %8 = vector.load %arg3[%c0_3, %c0_4] : memref<64x50xf32, #tpu.memory_space<vmem>>, vector<64x50xf32>
    tpu.vector_store %arg3[%c0_3, %c0_4], %7 {strides = array<i32>} : memref<64x50xf32, #tpu.memory_space<vmem>>, vector<64x50xf32>,
    return
  }
  func.func @transform_0(%arg0: i32) -> (i32, i32) {
    %c0_i32 = arith.constant 0 : i32
    %c0_i32_0 = arith.constant 0 : i32
    return %arg0, %c0_i32 : i32, i32
  }
  func.func @transform_1(%arg0: i32) -> (i32, i32) {
    %c0_i32 = arith.constant 0 : i32
    %c0_i32_0 = arith.constant 0 : i32
    %c0_i32_1 = arith.constant 0 : i32
    return %c0_i32, %c0_i32_0 : i32, i32
  }
  func.func @transform_2(%arg0: i32) -> (i32, i32) {
    %c0_i32 = arith.constant 0 : i32
    %c0_i32_0 = arith.constant 0 : i32
    return %arg0, %c0_i32 : i32, i32
  }
}

</mosaic_0001>

<bundles_post_ra>
// kernel: word_embed.1
= control target key start
LH: loop header
LB: loop body
LE: loop exit
PB: predicated region body
PF: predicated region fallthrough
CT: control target
= control target key end

     0   :  { %7 = vsyncpa [#allocation3], 0  ;;  %s1996_s0 = inlined_call_operand.vmem [shape: s32[256,1], index: 0, kind: input, shape index: {}]   ;;  %s1997_s1 = inlined_call_operand.vmem [shape: f32[50,50], index: 1, kind: input, shape index: {}]   ;;  %s1998_s2 = inlined_call_operand.hbm [shape: f32[256,50], index: 2, kind: output, shape index: {}]  }
   0x1   :  { %9 = vsyncpa [#allocation3 + $0x1], 0  ;;  %s1566_s9 = smov 0   ;;  %s1568_s10 = smov 0  }
   0x2   :  { %s1570_s11 = smov 0   ;;  %s1572_s12 = smov 0  }
   0x3 LB: > { %s1587_s13 = sadd.s32 4294967295, %s1544_s12   ;;  %s1148_s14 = sadd.s32 4294967294, %s1544_s12   ;;  %s1544_s12 = sphi %s1572_s12, %s2004_s12   ;;  %s1540_s11 = sphi %s1570_s11, %s2003_s11   ;;  %s1536_s10 = sphi %s1568_s10, %s2002_s10   ;;  %s1532_s9 = sphi %s1566_s9, %s2001_s9  }
   0x4   : > { %s1591_s15 = sadd.s32 1, %s1544_s12   ;;  %s69_s16 = sadd.s32 1, %s1540_s11 }
   0x5   : > { %s66_s17 = ssub.s32 %s1544_s12, %s1591_s15  ;;  %p79_p0 = scmp.ne.s32.totalorder %s1540_s11, %s1536_s10 }
   0x6   : > { %p67_p1 = scmp.eq.s32.totalorder %s66_s17, 0  ;;  %p80_p2 = scmp.eq.s32.totalorder %s1587_s13, 3 }
   0x7   : > { %p85_p3 = scmp.ne.s32.totalorder %s1536_s10, %s1532_s9  ;;  %p86_p4 = scmp.eq.s32.totalorder %s1148_s14, 3 }
   0x8   : > { %s1602_s18 = scalar_select %p67_p1, %s1540_s11, %s69_s16  }
   0x9   : > { %p1604_p5 = por %p80_p2, %p79_p0  ;;  %p1608_p6 = por %p86_p4, %p85_p3 }
   0xa   : > { %p1151_p7 = scmp.ge.s32.totalorder %s1544_s12, 1  ;;  %p116_p8 = scmp.lt.s32.totalorder %s1544_s12, 5 }
   0xc   : > { %p117_p9 = pnand %p1151_p7, %p116_p8 }
   0xd   : > { %s1153_s21 = sshll.u32 (!%p117_p9), %s1587_s13, 3  ;;  %s1192_s24 = sshll.u32 (!%p117_p9), %s1587_s13, 10 }
   0xe   : > { %120 = sbr.rel (%p117_p9) target bundleno = 431 (0x1af), region = 28  ;;  %p139_p10 = scmp.lt.s32.totalorder (!%p117_p9), %s1153_s21, 31 }
   0xf   : > { %s1946_s28 = scalar_lea.hbm (!%p117_p9), %s1998_s2, %s1192_s24  ;;  %s1548_s30 = smov (!%p117_p9), [#allocation2]  }
  0x10   : > { %s1488_s3 = sshll.u32 (!%p117_p9), %s1548_s30, 4  ;;  %s1489_s3 = int_to_ptr.vmem [resolvable:$false] %s1488_s3 }
  0x11   : > { %s1490_s4 = scalar_lea.vmem (!%p117_p9), %s1489_s3, 2048 }
  0x13   : > { %v209_v0 = vld [vmem:[%s1997_s1 + $0x30] sm:$0x3]  ;;  %vm235_vm0 = vcmask 1041408   ;;  %v208_v1 = vld [vmem:[%s1997_s1 + $0x28] sm:$0xff]  ;;  %v1546_v2 = vmov 0   ;;  %v207_v5 = vld [vmem:[%s1997_s1 + $0x20] sm:$0xff]  ;;  %v153_v52 = vlaneseq }
  0x14   : > { %1483 = vset.pattern.permute.xlu1 %v1546_v2  ;;  %1482 = vset.pattern.permute.xlu0 %v1546_v2  ;;  %v237_v3 = vsel %vm235_vm0, %v209_v0, 0  ;;  %v1621_v4 = vand.u32 4294901760, %v208_v1  ;;  %v206_v6 = vld [vmem:[%s1997_s1 + $0x18] sm:$0xff]  ;;  %v1631_v8 = vand.u32 4294901760, %v207_v5  ;;  %v205_v10 = vld [vmem:[%s1997_s1 + $0x10] sm:$0xff]  ;;  %v204_v11 = vld [vmem:[%s1997_s1 + $0x8] sm:$0xff] }
  0x15   : > { %v1629_v7 = vand.u32 4294901760, %v237_v3  ;;  %v1633_v9 = vand.u32 4294901760, %v206_v6  ;;  %s2006_s21 = smov (!%p139_p10, %s1153_s21), 31  ;;  %v1644_v13 = vand.u32 4294901760, %v205_v10  ;;  %v203_v16 = vld [vmem:[%s1997_s1] sm:$0xff]  ;;  %v1663_v19 = vand.u32 4294901760, %v204_v11 }
  0x16   : > { %v1642_v12 = vsub.f32 %v208_v1, %v1621_v4  ;;  %v1650_v15 = vsub.f32 %v207_v5, %v1631_v8  ;;  %s1154_s8 = sshll.u32 %s2006_s21, 3  ;;  %v1685_v26 = vand.u32 4294901760, %v203_v16  ;;  %v154_v53 = vand.u32 127, %v153_v52  ;;  %s135_s21 = sand.u32 1, %s1536_s10  }
  0x17   : > { %v1647_v14 = vsub.f32 %v237_v3, %v1629_v7  ;;  %1283 = vmatprep.subr.mxu0 %v1629_v7  ;;  %v1660_v18 = vsub.f32 %v206_v6, %v1633_v9  ;;  %s1668_s17 = scalar_lea.vmem %s1996_s0, %s1154_s8  ;;  %v1682_v25 = vsub.f32 %v205_v10, %v1644_v13  ;;  %v1695_v31 = vsub.f32 %v204_v11, %v1663_v19  ;;  %s1152_s22 = sshll.u32 %s135_s21, 6 }
  0x18   : > { %v1657_v17 = vand.u32 4294901760, %v1642_v12  ;;  %1284 = vmatpush3.msra.mxu0 %v1629_v7  ;;  %v1674_v21 = vand.u32 4294901760, %v1650_v15  ;;  %v147_v22 = vld [vmem:[%s1668_s17 + $0x10] sm:$0xff]  ;;  %v145_v23 = vld [vmem:[%s1668_s17] sm:$0xff]  ;;  %v148_v28 = vld [vmem:[%s1668_s17 + $0x18] sm:$0xff]  ;;  %v1705_v36 = vsub.f32 %v203_v16, %v1685_v26  ;;  %vm210_vm1 = vcmask 408576  }
  0x19   : > { %v1671_v20 = vand.u32 4294901760, %v1647_v14  ;;  %1285 = vmatprep.subr.mxu0 %v1621_v4  ;;  %162 = vperm.xlu1 %1483, %v147_v22   ;;  %v146_v29 = vld [vmem:[%s1668_s17 + $0x8] sm:$0xff]  ;;  %v1692_v30 = vand.u32 4294901760, %v1660_v18  ;;  %v1702_v35 = vand.u32 4294901760, %v1682_v25  ;;  %v149_v38 = vld [vmem:[%s1668_s17 + $0x20] sm:$0xff]  ;;  %v1713_v40 = vand.u32 4294901760, %v1695_v31 }
  0x1a   : > { %v420_v24 = vsub.f32 %v1642_v12, %v1657_v17  ;;  %1286 = vmatpush3.msra.mxu0 %v1621_v4  ;;  %156 = vperm.xlu0 %1482, %v145_v23   ;;  %v427_v33 = vsub.f32 %v1650_v15, %v1674_v21  ;;  %v150_v37 = vld [vmem:[%s1668_s17 + $0x28] sm:$0xff]  ;;  %v1720_v43 = vand.u32 4294901760, %v1705_v36  ;;  %v152_v44 = vld [vmem:[%s1668_s17 + $0x38] sm:$0xff]  ;;  %v151_v45 = vld [vmem:[%s1668_s17 + $0x30] sm:$0xff]  ;;  %v1547_v56 = vmov 0.0   ;;  %s1926_s23 = scalar_lea.vmem [#allocation2], %s1152_s22 }
  0x1b   : > { %v413_v27 = vsub.f32 %v1647_v14, %v1671_v20  ;;  %1287 = vmatprep.subr.mxu0 %v1631_v8  ;;  %v434_v39 = vsub.f32 %v1660_v18, %v1692_v30  ;;  %v441_v42 = vsub.f32 %v1682_v25, %v1702_v35  ;;  %v448_v47 = vsub.f32 %v1695_v31, %v1713_v40  ;;  %s1086_s25 = sshll.u32 %s1926_s23, 4  ;;  %s1956_s13 = scalar_lea.sflag [#allocation3], %s135_s21  ;;  %s1948_s25 = int_to_ptr.vmem [resolvable:$true] %s1086_s25 }
  0x1c   : > { %1288 = vmatpush3.msra.mxu0 %v1631_v8  ;;  %v421_v34 = vand.u32 4294901760, %v420_v24  ;;  %v428_v41 = vand.u32 4294901760, %v427_v33  ;;  %v455_v49 = vsub.f32 %v1705_v36, %v1720_v43  ;;  %s1484_s29 = scalar_lea.vmem %s1948_s25, 1024  ;;  %p1491_p0 = scmp.lt.s32.totalorder %s1948_s25, %s1489_s3 }
  0x1d   : > { %v414_v32 = vand.u32 4294901760, %v413_v27  ;;  %1289 = vmatprep.subr.mxu0 %v1633_v9  ;;  %165 = vperm.xlu1 %1483, %v148_v28   ;;  %v435_v46 = vand.u32 4294901760, %v434_v39  ;;  %v442_v48 = vand.u32 4294901760, %v441_v42  ;;  %v449_v50 = vand.u32 4294901760, %v448_v47  ;;  %p1485_p11 = scmp.ne.s32.totalorder %s1948_s25, %s1484_s29  ;;  %p1492_p1 = scmp.lt.s32.totalorder %s1490_s4, %s1484_s29 }
  0x1e   : > { %159 = vperm.xlu0 %1482, %v146_v29   ;;  %1290 = vmatpush3.msra.mxu0 %v1633_v9  ;;  %v456_v51 = vand.u32 4294901760, %v455_v49 }
  0x1f   : > { %1309 = vmatprep.subr.mxu1 %v414_v32  ;;  %1291 = vmatprep.subr.mxu0 %v1644_v13  ;;  %p1486_p12 = pnand %p1485_p11, %p1604_p5  ;;  %p1493_p2 = por %p1492_p1, %p1491_p0 }
  0x20   : > { %1310 = vmatpush3.msra.mxu1 %v414_v32  ;;  %1292 = vmatpush3.msra.mxu0 %v1644_v13 }
  0x21   : > { %1311 = vmatprep.subr.mxu1 %v421_v34  ;;  %171 = vperm.xlu1 %1483, %v150_v37   ;;  %p1487_p13 = pneg %p1486_p12 }
  0x22   : > { %168 = vperm.xlu0 %1482, %v149_v38   ;;  %1312 = vmatpush3.msra.mxu1 %v421_v34 }
  0x23   : > { %1293 = vmatprep.subr.mxu0 %v1663_v19  ;;  %1313 = vmatprep.subr.mxu1 %v428_v41  ;;  %p1494_p3 = pnand %p1493_p2, %p1487_p13 }
  0x24   : > { %1294 = vmatpush3.msra.mxu0 %v1663_v19  ;;  %1314 = vmatpush3.msra.mxu1 %v428_v41 }
  0x25   : > { %1295 = vmatprep.subr.mxu0 %v1685_v26  ;;  %177 = vperm.xlu1 %1483, %v152_v44  }
  0x26   : > { %174 = vperm.xlu0 %1482, %v151_v45   ;;  %1315 = vmatprep.subr.mxu1 %v435_v46 }
  0x27   : > { %1296 = vmatpush3.msra.mxu0 %v1685_v26  ;;  %1316 = vmatpush3.msra.mxu1 %v435_v46 }
  0x28   : > { %1335 = vmatprep.subr.mxu0 %v1647_v14  ;;  %1317 = vmatprep.subr.mxu1 %v442_v48 }
  0x29   : > { %1318 = vmatpush3.msra.mxu1 %v442_v48 }
  0x2a   : > { %1319 = vmatprep.subr.mxu1 %v449_v50 }
  0x2b   : > { %1320 = vmatpush3.msra.mxu1 %v449_v50 }
  0x2c   : > { %1321 = vmatprep.subr.mxu1 %v456_v51 }
  0x2d   : > { %1322 = vmatpush3.msra.mxu1 %v456_v51 }
  0x2e   : > { %1361 = vmatprep.subr.mxu1 %v1629_v7 }
  0x94   : > { %v163_v54 = vpop.permute.xlu1 %162 }
  0x95   : > { %v157_v55 = vpop.permute.xlu0 %156  ;;  %vm181_vm2 = vcmp.eq.s32.totalorder %v163_v54, %v154_v53 }
  0x96   : > { %vm179_vm3 = vcmp.eq.s32.totalorder %v157_v55, %v154_v53  ;;  %v1735_v57 = vsel %vm181_vm2, 1.0, %v1547_v56 }
  0x97   : > { %v1737_v58 = vsel %vm179_vm3, 1.0, %v1547_v56  ;;  %v218_v59 = vsel %vm210_vm1, %v1735_v57, 0 }
  0x98   : > { %1323 = vmatprep.mubr.msk.f32.mxu1 %vm210_vm1, %v1737_v58  ;;  %v212_v60 = vsel %vm210_vm1, %v1737_v58, 0  ;;  %v1745_v61 = vsub.f32 %v218_v59, %v218_v59  ;;  %v166_v62 = vpop.permute.xlu1 %165 }
  0x99   : > { %v160_v63 = vpop.permute.xlu0 %159  ;;  %v1747_v0 = vsub.f32 %v212_v60, %v212_v60  ;;  %vm182_vm4 = vcmp.eq.s32.totalorder %v166_v62, %v154_v53 }
  0x9a   : > { %vm180_vm5 = vcmp.eq.s32.totalorder %v160_v63, %v154_v53  ;;  %v1749_v1 = vsel %vm182_vm4, 1.0, %v1547_v56  ;;  %v333_v24 = vand.u32 4294901760, %v1745_v61 }
  0x9b   : > { %v1751_v2 = vsel %vm180_vm5, 1.0, %v1547_v56  ;;  %v313_v3 = vand.u32 4294901760, %v1747_v0  ;;  %v221_v5 = vsel %vm210_vm1, %v1749_v1, 0 }
  0x9c   : > { %v215_v6 = vsel %vm210_vm1, %v1751_v2, 0  ;;  %1324 = vmatmul.mubr.msk.f32.vlgmr.msra.gmra.mxu1 %vm210_vm1, %v1751_v2  ;;  %v1760_v10 = vsub.f32 %v221_v5, %v221_v5  ;;  %v172_v16 = vpop.permute.xlu1 %171  ;;  %v334_v44 = vsub.f32 %v1745_v61, %v333_v24 }
  0x9d   : > { %v1762_v11 = vsub.f32 %v215_v6, %v215_v6  ;;  %1326 = vmatprep.mubr.msk.f32.mxu1 %vm210_vm1, %v1735_v57  ;;  %v169_v22 = vpop.permute.xlu0 %168  ;;  %1362 = vmatpush3.msra.mxu1 %v1629_v7  ;;  %v314_v23 = vsub.f32 %v1747_v0, %v313_v3  ;;  %vm184_vm6 = vcmp.eq.s32.totalorder %v172_v16, %v154_v53 }
  0x9e   : > { %vm183_vm7 = vcmp.eq.s32.totalorder %v169_v22, %v154_v53  ;;  %1363 = vmatprep.subr.mxu1 %v1621_v4  ;;  %v1772_v27 = vsel %vm184_vm6, 1.0, %v1547_v56  ;;  %v343_v37 = vand.u32 4294901760, %v1760_v10  ;;  %v335_v54 = vand.u32 4294901760, %v334_v44 }
  0x9f   : > { %v1774_v28 = vsel %vm183_vm7, 1.0, %v1547_v56  ;;  %v315_v29 = vand.u32 4294901760, %v314_v23  ;;  %1364 = vmatpush3.msra.mxu1 %v1621_v4  ;;  %v323_v32 = vand.u32 4294901760, %v1762_v11  ;;  %v227_v33 = vsel %vm210_vm1, %v1772_v27, 0 }
  0xa0   : > { %v224_v34 = vsel %vm210_vm1, %v1774_v28, 0  ;;  %1327 = vmatmul.mubr.msk.f32.gmra.mxu1 %vm210_vm1, %v1749_v1  ;;  %1365 = vmatprep.subr.mxu1 %v1631_v8  ;;  %v178_v39 = vpop.permute.xlu1 %177  ;;  %v1794_v45 = vsub.f32 %v227_v33, %v227_v33  ;;  %v344_v52 = vsub.f32 %v1760_v10, %v343_v37 }
  0xa1   : > { %v1786_v38 = vsub.f32 %v224_v34, %v224_v34  ;;  %1297 = vmatprep.mubr.f32.mxu0 %v315_v29  ;;  %1329 = vmatprep.mubr.msk.f32.mxu1 %vm210_vm1, %v1774_v28  ;;  %v175_v41 = vpop.permute.xlu0 %174  ;;  %v324_v42 = vsub.f32 %v1762_v11, %v323_v32  ;;  %vm186_vm8 = vcmp.eq.s32.totalorder %v178_v39, %v154_v53 }
  0xa2   : > { %vm185_vm9 = vcmp.eq.s32.totalorder %v175_v41, %v154_v53  ;;  %1366 = vmatpush3.msra.mxu1 %v1631_v8  ;;  %v1797_v46 = vsel %vm186_vm8, 1.0, %v1547_v56  ;;  %v345_v62 = vand.u32 4294901760, %v344_v52 }
  0xa3   : > { %v1799_v47 = vsel %vm185_vm9, 1.0, %v1547_v56  ;;  %1367 = vmatprep.subr.mxu1 %v1633_v9  ;;  %v325_v48 = vand.u32 4294901760, %v324_v42  ;;  %v353_v49 = vand.u32 4294901760, %v1786_v38  ;;  %v233_v50 = vsel %vm210_vm1, %v1797_v46, 0 }
  0xa4   : > { %v230_v51 = vsel %vm210_vm1, %v1799_v47, 0  ;;  %1330 = vmatmul.mubr.msk.f32.gmra.mxu1 %vm210_vm1, %v1772_v27  ;;  %v363_v56 = vand.u32 4294901760, %v1794_v45  ;;  %v1820_v59 = vsub.f32 %v233_v50, %v233_v50 }
  0xa5   : > { %v1812_v53 = vsub.f32 %v230_v51, %v230_v51  ;;  %1298 = vmatmul.mubr.f32.vlgmr.msra.gmra.mxu0 %v325_v48  ;;  %1332 = vmatprep.mubr.msk.f32.mxu1 %vm210_vm1, %v1799_v47  ;;  %v354_v55 = vsub.f32 %v1786_v38, %v353_v49 }
  0xa6   : > { %1336 = vmatpush3.msra.mxu0 %v1647_v14  ;;  %1368 = vmatpush3.msra.mxu1 %v1633_v9  ;;  %v364_v5 = vsub.f32 %v1794_v45, %v363_v56  ;;  %v383_v6 = vand.u32 4294901760, %v1820_v59 }
  0xa7   : > { %1300 = vmatprep.mubr.f32.mxu0 %v335_v54  ;;  %1369 = vmatprep.subr.mxu1 %v1644_v13  ;;  %v373_v60 = vand.u32 4294901760, %v1812_v53  ;;  %v355_v63 = vand.u32 4294901760, %v354_v55 }
  0xa8   : > { %1337 = vmatprep.subr.mxu0 %v1642_v12  ;;  %1370 = vmatpush3.msra.mxu1 %v1644_v13  ;;  %v365_v16 = vand.u32 4294901760, %v364_v5  ;;  %v384_v22 = vsub.f32 %v1820_v59, %v383_v6 }
  0xa9   : > { %1333 = vmatmul.mubr.msk.f32.gmra.mxu1 %vm210_vm1, %v1797_v46  ;;  %1338 = vmatpush3.msra.mxu0 %v1642_v12  ;;  %v374_v14 = vsub.f32 %v1812_v53, %v373_v60 }
  0xaa   : > { %1371 = vmatprep.subr.mxu1 %v1663_v19  ;;  %1301 = vmatmul.mubr.f32.gmra.mxu0 %v345_v62 }
  0xab   : > { %1339 = vmatprep.subr.mxu0 %v1650_v15  ;;  %1372 = vmatpush3.msra.mxu1 %v1663_v19  ;;  %v375_v12 = vand.u32 4294901760, %v374_v14 }
  0xac   : > { %1375 = vmatprep.mubr.f32.mxu1 %v313_v3  ;;  %1303 = vmatprep.mubr.f32.mxu0 %v355_v63 }
  0xad   : > { %1340 = vmatpush3.msra.mxu0 %v1650_v15  ;;  %1373 = vmatprep.subr.mxu1 %v1685_v26  ;;  %v385_v15 = vand.u32 4294901760, %v384_v22 }
  0xae   : > { %1341 = vmatprep.subr.mxu0 %v1660_v18  ;;  %1374 = vmatpush3.msra.mxu1 %v1685_v26 }
  0xaf   : > { %1342 = vmatpush3.msra.mxu0 %v1660_v18  ;;  %1376 = vmatmul.mubr.f32.vlgmr.msra.gmra.mxu1 %v323_v32 }
  0xb0   : > { %1304 = vmatmul.mubr.f32.gmra.mxu0 %v365_v16  ;;  %1378 = vmatprep.mubr.f32.mxu1 %v333_v24 }
  0xb1   : > { %1306 = vmatprep.mubr.f32.mxu0 %v375_v12  ;;  %1343 = vmatprep.subr.mxu0 %v1682_v25 }
  0xb2   : > { %1413 = vmatprep.subr.mxu1 %v1629_v7  ;;  %1344 = vmatpush3.msra.mxu0 %v1682_v25 }
  0xb3   : > { %1414 = vmatpush3.msra.mxu1 %v1629_v7  ;;  %1345 = vmatprep.subr.mxu0 %v1695_v31 }
  0xb4   : > { %1379 = vmatmul.mubr.f32.gmra.mxu1 %v343_v37  ;;  %1415 = vmatprep.subr.mxu1 %v1621_v4 }
  0xb5   : > { %1307 = vmatmul.mubr.f32.gmra.mxu0 %v385_v15  ;;  %1381 = vmatprep.mubr.f32.mxu1 %v353_v49 }
  0xb6   : > { %1346 = vmatpush3.msra.mxu0 %v1695_v31  ;;  %1416 = vmatpush3.msra.mxu1 %v1621_v4 }
  0xb7   : > { %1347 = vmatprep.subr.mxu0 %v1705_v36  ;;  %1349 = vmatprep.mubr.f32.mxu0 %v1747_v0 }
  0xb8   : > { %1417 = vmatprep.subr.mxu1 %v1631_v8  ;;  %1348 = vmatpush3.msra.mxu0 %v1705_v36 }
  0xb9   : > { %1418 = vmatpush3.msra.mxu1 %v1631_v8  ;;  %1387 = vmatprep.subr.mxu0 %v1671_v20 }
  0xba   : > { %1382 = vmatmul.mubr.f32.gmra.mxu1 %v363_v56  ;;  %1419 = vmatprep.subr.mxu1 %v1633_v9 }
  0xbb   : > { %1350 = vmatmul.mubr.f32.vlgmr.msra.gmra.mxu0 %v1762_v11  ;;  %1384 = vmatprep.mubr.f32.mxu1 %v373_v60 }
  0xbc   : > { %1388 = vmatpush3.msra.mxu0 %v1671_v20  ;;  %1420 = vmatpush3.msra.mxu1 %v1633_v9 }
  0xbd   : > { %1352 = vmatprep.mubr.f32.mxu0 %v1745_v61  ;;  %1421 = vmatprep.subr.mxu1 %v1644_v13 }
  0xbe   : > { %1389 = vmatprep.subr.mxu0 %v1657_v17  ;;  %1422 = vmatpush3.msra.mxu1 %v1644_v13 }
  0xbf   : > { %1385 = vmatmul.mubr.f32.gmra.mxu1 %v383_v6  ;;  %1390 = vmatpush3.msra.mxu0 %v1657_v17 }
  0xc0   : > { %1423 = vmatprep.subr.mxu1 %v1663_v19  ;;  %1353 = vmatmul.mubr.f32.gmra.mxu0 %v1760_v10 }
  0xc1   : > { %1391 = vmatprep.subr.mxu0 %v1674_v21  ;;  %1424 = vmatpush3.msra.mxu1 %v1663_v19 }
  0xc2   : > { %1427 = vmatprep.mubr.msk.f32.mxu1 %vm210_vm1, %v1737_v58  ;;  %1355 = vmatprep.mubr.f32.mxu0 %v1786_v38 }
  0xc3   : > { %1392 = vmatpush3.msra.mxu0 %v1674_v21  ;;  %1425 = vmatprep.subr.mxu1 %v1685_v26 }
  0xc4   : > { %1393 = vmatprep.subr.mxu0 %v1692_v30  ;;  %1426 = vmatpush3.msra.mxu1 %v1685_v26 }
  0xc5   : > { %1394 = vmatpush3.msra.mxu0 %v1692_v30  ;;  %1428 = vmatmul.mubr.msk.f32.vlgmr.msra.gmra.mxu1 %vm210_vm1, %v1751_v2 }
  0xc6   : > { %1356 = vmatmul.mubr.f32.gmra.mxu0 %v1794_v45  ;;  %1430 = vmatprep.mubr.msk.f32.mxu1 %vm210_vm1, %v1735_v57 }
  0xc7   : > { %1358 = vmatprep.mubr.f32.mxu0 %v1812_v53  ;;  %1395 = vmatprep.subr.mxu0 %v1702_v35 }
  0xc8   : > { %1396 = vmatpush3.msra.mxu0 %v1702_v35 }
  0xc9   : > { %1397 = vmatprep.subr.mxu0 %v1713_v40  ;;  %1431 = vmatmul.mubr.msk.f32.gmra.mxu1 %vm210_vm1, %v1749_v1 }
  0xca   : > { %1359 = vmatmul.mubr.f32.gmra.mxu0 %v1820_v59  ;;  %1433 = vmatprep.mubr.msk.f32.mxu1 %vm210_vm1, %v1774_v28 }
  0xcb   : > { %1398 = vmatpush3.msra.mxu0 %v1713_v40  ;;  %1401 = vmatprep.mubr.msk.f32.mxu0 %vm210_vm1, %v1737_v58 }
  0xcc   : > { %1399 = vmatprep.subr.mxu0 %v1720_v43 }
  0xcd   : > { %1400 = vmatpush3.msra.mxu0 %v1720_v43  ;;  %1434 = vmatmul.mubr.msk.f32.gmra.mxu1 %vm210_vm1, %v1772_v27 }
  0xce   : > { %1402 = vmatmul.mubr.msk.f32.vlgmr.msra.gmra.mxu0 %vm210_vm1, %v1751_v2  ;;  %1436 = vmatprep.mubr.msk.f32.mxu1 %vm210_vm1, %v1799_v47 }
  0xcf   : > { %1404 = vmatprep.mubr.msk.f32.mxu0 %vm210_vm1, %v1735_v57 }
  0xd1   : > { %1437 = vmatmul.mubr.msk.f32.gmra.mxu1 %vm210_vm1, %v1797_v46 }
  0xd2   : > { %1405 = vmatmul.mubr.msk.f32.gmra.mxu0 %vm210_vm1, %v1749_v1 }
  0xd3   : > { %1407 = vmatprep.mubr.msk.f32.mxu0 %vm210_vm1, %v1774_v28 }
  0xd6   : > { %1408 = vmatmul.mubr.msk.f32.gmra.mxu0 %vm210_vm1, %v1772_v27 }
  0xd7   : > { %1410 = vmatprep.mubr.msk.f32.mxu0 %vm210_vm1, %v1799_v47 }
  0xda   : > { %1411 = vmatmul.mubr.msk.f32.gmra.mxu0 %vm210_vm1, %v1797_v46 }
 0x15c   : > { %v1325_v4 = vpop.f32.mrf.mxu1 }
 0x15e   : > { %v493_v7 = vpop.f32.mrf.mxu1 }
 0x160   : > { %v1328_v8 = vpop.f32.mrf.mxu1 }
 0x162   : > { %v505_v9 = vpop.f32.mrf.mxu1 }
 0x164   : > { %v1331_v13 = vpop.f32.mrf.mxu1 }
 0x165   : > { %v1299_v17 = vpop.f32.mrf.mxu0 }
 0x166   : > { %v517_v18 = vpop.f32.mrf.mxu1  ;;  %v500_v28 = vadd.f32 %v1325_v4, %v1299_v17 }
 0x167   : > { %v317_v19 = vpop.f32.mrf.mxu0 }
 0x168   : > { %v494_v33 = vadd.f32 %v493_v7, %v317_v19 }
 0x169   : > { %v1334_v20 = vpop.f32.mrf.mxu1 }
 0x16a   : > { %v1302_v21 = vpop.f32.mrf.mxu0 }
 0x16b   : > { %v529_v25 = vpop.f32.mrf.mxu1  ;;  %v512_v39 = vadd.f32 %v1328_v8, %v1302_v21 }
 0x16c   : > { %v337_v26 = vpop.f32.mrf.mxu0 }
 0x16d   : > { %v506_v44 = vadd.f32 %v505_v9, %v337_v26 }
 0x16f   : > { %v1377_v30 = vpop.f32.mrf.mxu1 }
 0x170   : > { %v1305_v31 = vpop.f32.mrf.mxu0 }
 0x171   : > { %v750_v35 = vpop.f32.mrf.mxu1  ;;  %v524_v49 = vadd.f32 %v1331_v13, %v1305_v31 }
 0x172   : > { %v357_v36 = vpop.f32.mrf.mxu0 }
 0x173   : > { %v518_v53 = vadd.f32 %v517_v18, %v357_v36 }
 0x174   : > { %v1380_v40 = vpop.f32.mrf.mxu1 }
 0x175   : > { %v1308_v43 = vpop.f32.mrf.mxu0 }
 0x176   : > { %v766_v57 = vpop.f32.mrf.mxu1  ;;  %v536_v62 = vadd.f32 %v1334_v20, %v1308_v43 }
 0x177   : > { %v377_v58 = vpop.f32.mrf.mxu0 }
 0x178   : > { %v530_v22 = vadd.f32 %v529_v25, %v377_v58 }
 0x17a   : > { %v1383_v61 = vpop.f32.mrf.mxu1 }
 0x17b   : > { %v1351_v0 = vpop.f32.mrf.mxu0 }
 0x17c   : > { %v782_v1 = vpop.f32.mrf.mxu1  ;;  %v629_v34 = vadd.f32 %v1351_v0, %v500_v28 }
 0x17d   : > { %v621_v2 = vpop.f32.mrf.mxu0 }
 0x17e   : > { %v622_v41 = vadd.f32 %v621_v2, %v494_v33  ;;  %v759_v46 = vadd.f32 %v1377_v30, %v629_v34 }
 0x17f   : > { %v1386_v3 = vpop.f32.mrf.mxu1 }
 0x180   : > { %v1354_v10 = vpop.f32.mrf.mxu0  ;;  %v751_v52 = vadd.f32 %v750_v35, %v622_v41 }
 0x181   : > { %v1921_v11 = vpop.f32.mrf.mxu1  ;;  %v643_v45 = vadd.f32 %v1354_v10, %v512_v39 }
 0x182   : > { %v635_v23 = vpop.f32.mrf.mxu0 }
 0x183   : > { %v636_v50 = vadd.f32 %v635_v23, %v506_v44  ;;  %v775_v60 = vadd.f32 %v1380_v40, %v643_v45 }
 0x185   : > { %v1429_v24 = vpop.f32.mrf.mxu1  ;;  %v767_v16 = vadd.f32 %v766_v57, %v636_v50 }
 0x186   : > { %v1357_v27 = vpop.f32.mrf.mxu0 }
 0x187   : > { %v1018_v29 = vpop.f32.mrf.mxu1  ;;  %v657_v55 = vadd.f32 %v1357_v27, %v524_v49 }
 0x188   : > { %v649_v32 = vpop.f32.mrf.mxu0 }
 0x189   : > { %v1432_v37 = vpop.f32.mrf.mxu1  ;;  %v650_v5 = vadd.f32 %v649_v32, %v518_v53  ;;  %v791_v9 = vadd.f32 %v1383_v61, %v657_v55 }
 0x18a   : > { %v1360_v38 = vpop.f32.mrf.mxu0 }
 0x18b   : > { %v1030_v47 = vpop.f32.mrf.mxu1  ;;  %v671_v4 = vadd.f32 %v1360_v38, %v536_v62  ;;  %v783_v21 = vadd.f32 %v782_v1, %v650_v5 }
 0x18c   : > { %v663_v42 = vpop.f32.mrf.mxu0 }
 0x18d   : > { %v1435_v63 = vpop.f32.mrf.mxu1  ;;  %v664_v18 = vadd.f32 %v663_v42, %v530_v22  ;;  %v807_v31 = vadd.f32 %v1386_v3, %v671_v4 }
 0x18e   : > { %v1403_v48 = vpop.f32.mrf.mxu0 }
 0x18f   : > { %v905_v51 = vadd.f32 %v1403_v48, %v759_v46  ;;  %v1042_v13 = vpop.f32.mrf.mxu1  ;;  %v799_v57 = vadd.f32 %v1921_v11, %v664_v18 }
 0x190   : > { %v898_v54 = vpop.f32.mrf.mxu0 }
 0x191   : > { %v1025_v56 = vadd.f32 %v1429_v24, %v905_v51  ;;  %v899_v59 = vadd.f32 %v898_v54, %v751_v52  ;;  %v1438_v35 = vpop.f32.mrf.mxu1 }
 0x192   : > { %v1406_v14 = vpop.f32.mrf.mxu0 }
 0x193   : > { %1065 = vst.msk [vmem:[%s1926_s23 + $0x8] sm:$0xff] %vm210_vm1, %v1025_v56  ;;  %v1019_v6 = vadd.f32 %v1018_v29, %v899_v59  ;;  %v917_v12 = vadd.f32 %v1406_v14, %v775_v60  ;;  %v1054_v1 = vpop.f32.mrf.mxu1 }
 0x194   : > { %v910_v15 = vpop.f32.mrf.mxu0 }
 0x195   : > { %1064 = vst.msk [vmem:[%s1926_s23] sm:$0xff] %vm210_vm1, %v1019_v6  ;;  %v1037_v7 = vadd.f32 %v1432_v37, %v917_v12  ;;  %v911_v8 = vadd.f32 %v910_v15, %v767_v16 }
 0x196   : > { %v1409_v17 = vpop.f32.mrf.mxu0 }
 0x197   : > { %1067 = vst.msk [vmem:[%s1926_s23 + $0x18] sm:$0xff] %vm210_vm1, %v1037_v7  ;;  %v1031_v19 = vadd.f32 %v1030_v47, %v911_v8  ;;  %v929_v20 = vadd.f32 %v1409_v17, %v791_v9 }
 0x198   : > { %v922_v25 = vpop.f32.mrf.mxu0 }
 0x199   : > { %1066 = vst.msk [vmem:[%s1926_s23 + $0x10] sm:$0xff] %vm210_vm1, %v1031_v19  ;;  %v1049_v26 = vadd.f32 %v1435_v63, %v929_v20  ;;  %v923_v30 = vadd.f32 %v922_v25, %v783_v21 }
 0x19a   : > { %v1412_v36 = vpop.f32.mrf.mxu0 }
 0x19b   : > { %1069 = vst.msk [vmem:[%s1926_s23 + $0x28] sm:$0xff] %vm210_vm1, %v1049_v26  ;;  %v1043_v40 = vadd.f32 %v1042_v13, %v923_v30  ;;  %v941_v43 = vadd.f32 %v1412_v36, %v807_v31 }
 0x19c   : > { %v934_v58 = vpop.f32.mrf.mxu0 }
 0x19d   : > { %1068 = vst.msk [vmem:[%s1926_s23 + $0x20] sm:$0xff] %vm210_vm1, %v1043_v40  ;;  %v1061_v61 = vadd.f32 %v1438_v35, %v941_v43  ;;  %v935_v0 = vadd.f32 %v934_v58, %v799_v57 }
 0x19f   : > { %1071 = vst.msk [vmem:[%s1926_s23 + $0x38] sm:$0xff] %vm210_vm1, %v1061_v61  ;;  %v1055_v2 = vadd.f32 %v1054_v1, %v935_v0 }
 0x1a1   : > { %1070 = vst.msk [vmem:[%s1926_s23 + $0x30] sm:$0xff] %vm210_vm1, %v1055_v2 }
 0x1a2   : > { %1497 = shalt.err (!%p1494_p3)
}
 0x1a3   : > { %s1498_s5 = scalar_lea.hbm %s1946_s28, 1024  ;;  %s1502_s8 = scalar_lea.hbm %s1998_s2, 4096 }
 0x1a4   : > { %p1499_p4 = scmp.ne.s32.totalorder %s1946_s28, %s1498_s5  ;;  %p1503_p9 = scmp.lt.s32.totalorder %s1946_s28, %s1998_s2 }
 0x1a5   : > { %p1504_p10 = scmp.lt.s32.totalorder %s1502_s8, %s1498_s5 }
 0x1a6   : > { %p1500_p7 = pnand %p1499_p4, %p1604_p5 }
 0x1a7   : > { %p1505_p11 = por %p1504_p10, %p1503_p9 }
 0x1a8   : > { %p1501_p8 = pneg %p1500_p7 }
 0x1aa   : > { %p1506_p12 = pnand %p1505_p11, %p1501_p8 }
 0x1ac   : > { %1509 = shalt.err (!%p1506_p12)
}
 0x1ad   : > { %s1549_s17 = smov 128   ;;  %s1550_s21 = smov 8  }
 0x1ae   : > { %1439 = dma.vmem_to_hbm [thread:$0]  (%p1604_p5), %s1948_s25, 1024, %s1946_s28, %s1956_s13, %s1549_s17, %s1549_s17, %s1550_s21  }
 0x1af PF: > { %p1445_p13 = scmp.ge.s32.totalorder %s1544_s12, 2  ;;  %s1101_s22 = sand.u32 1, %s1532_s9  }
 0x1b0   : > { %s1102_s23 = scalar_lea.sflag [#allocation3], %s1101_s22 }
 0x1b1   : > { %p1442_p0 = pnand %p1445_p13, %p1608_p6 }
 0x1b3   : > { %p1443_p1 = pneg %p1442_p0 }
 0x1b5   : > { %1527 = dma.done.wait (%p1443_p1), %s1102_s23, 1024  }
 0x1b6   : > { %1529 = vsyncadd (%p1443_p1), %s1102_s23, 4294966272  ;;  %p12_p2 = scmp.ge.s32.totalorder %s1591_s15, 6   ;;  %s2001_s9 = smov %s1536_s10 }
 0x1b7   : > { %s2002_s10 = smov %s1540_s11  ;;  %s2003_s11 = smov %s1602_s18 }
 0x1b8   : > { %s2004_s12 = smov %s1591_s15  ;;  %14 = sbr.rel (!%p12_p2) target bundleno = 3 (0x3), region = 63 }
 0x1bd   :  { %1107 = vsyncpa [#allocation3], 1 }
 0x1be   :  { %1109 = vsyncpa [#allocation3 + $0x1], 1 }

</bundles_post_ra>
